<compile_context>
chip_gen: v6e
topology: v6e:2x2x1
jax: 0.10.0
libtpu: 0.0.40
codegen_flags: <defaults>
</compile_context>

<pallas_src>
import functools
import math

import jax
import jax.numpy as jnp
from jax.experimental import pallas as pl
from jax.experimental.pallas import tpu as pltpu

_LN_EPS = 1e-5        # torch.nn.LayerNorm default
_NEG_MASK = -1e30     # finite "minus infinity" (avoids inf-inf -> NaN)


# ------------------------------------------------------------------ helpers
def _layernorm(x, g, b):
    x = x.astype(jnp.float32)
    mu = jnp.mean(x, axis=-1, keepdims=True)
    var = jnp.mean((x - mu) ** 2, axis=-1, keepdims=True)
    return (x - mu) * jax.lax.rsqrt(var + _LN_EPS) * g + b


def _softmax(x):
    # kernel-only softmax: EUP approx reciprocal keeps the divide off the VALU
    m = jnp.max(x, axis=-1, keepdims=True)
    e = jnp.exp(x - m)
    return e * pl.reciprocal(jnp.sum(e, axis=-1, keepdims=True), approx=True)


def _dot(a, b):
    return jnp.dot(a, b, preferred_element_type=jnp.float32)


def _vmem_capacity_bytes():
    try:
        return int(pltpu.get_tpu_info().vmem_capacity_bytes)
    except Exception:
        return 128 * 1024 * 1024


def _batch_block(bs):
    for cand in (8, 4, 2):
        if bs % cand == 0:
            return cand
    return 1


# --------------------------------------------------- kernel 1: patch embed
def _embed_kernel(patch_ref, convw_ref, cls_ref, pos_ref, maskemb_ref,
                  g_ref, b_ref, tok_ref, *, nq_pad):
    bf16 = jnp.bfloat16
    d = cls_ref.shape[-1]
    patches = jnp.dot(patch_ref[0].astype(bf16), convw_ref[...],
                      preferred_element_type=jnp.float32)            # (P, d)
    cls = cls_ref[...]                                               # (1, d)
    clip_rows = jnp.concatenate([cls, patches], axis=0) + pos_ref[...]
    mask_rows = jnp.broadcast_to(maskemb_ref[...] + cls, (nq_pad, d))
    tokens = jnp.concatenate([mask_rows, clip_rows], axis=0)         # (seq, d)
    tok_ref[0] = _layernorm(tokens, g_ref[...], b_ref[...])


# ------------------------------------------- kernel 2: transformer layers
def _layers_kernel(tok_in_ref, amask_ref,
                   ln1g_ref, ln1b_ref, wqkv_ref, bqkv_ref, wnq_ref, bnq_ref,
                   wo_ref, bo_ref, ln2g_ref, ln2b_ref, wfc_ref, bfc_ref,
                   wpr_ref, bpr_ref,
                   out_ref, tok_ref, *, nq, heads, head_dim, b_blk):
    """One (batch_block, layer) grid step: a full residual attention block."""
    l = pl.program_id(1)
    n_layers = pl.num_programs(1)
    d = heads * head_dim
    bf16 = jnp.bfloat16

    @pl.when(l == 0)
    def _load():
        tok_ref[...] = tok_in_ref[...]

    # layer weights: DMA'd once per grid step, reused by every image in block
    ln1g, ln1b = ln1g_ref[0], ln1b_ref[0]
    wqkv, bqkv = wqkv_ref[0], bqkv_ref[0]
    wnq, bnq = wnq_ref[0], bnq_ref[0]
    wo, bo = wo_ref[0], bo_ref[0]
    ln2g, ln2b = ln2g_ref[0], ln2b_ref[0]
    wfc, bfc = wfc_ref[0], bfc_ref[0]
    wpr, bpr = wpr_ref[0], bpr_ref[0]

    def to_heads(t):  # (rows, d) f32 -> (heads, rows, head_dim) bf16
        rows = t.shape[0]
        return jnp.transpose(t.astype(bf16).reshape(rows, heads, head_dim),
                             (1, 0, 2))

    # TODO(synk): folding (b_blk, seq) into one MXU M dim would further raise
    # MXU utilisation; weight-DMA amortization (the dominant win) is already
    # achieved by the per-image loop below.
    for b in range(b_blk):
        y = tok_ref[b]                                 # (seq, d) f32, resident
        amask = amask_ref[b].astype(jnp.float32)       # (nq, S) additive mask

        # ---------------- attention (fused full-width projections) ---------
        ln1 = _layernorm(y, ln1g, ln1b)
        clip_in = ln1[nq:].astype(bf16)                # CLIP tokens   (S, d)
        mask_in = ln1[:nq].astype(bf16)                # mask queries  (nq, d)

        qkv = _dot(clip_in, wqkv) + bqkv               # (S, 3d) f32
        newq = _dot(mask_in, wnq) + bnq                # (nq, d) f32

        # merged queries [mask ; clip] share k / v; heads become a batch dim
        q_all = jnp.concatenate([newq, qkv[:, :d]], axis=0)          # (seq, d)
        qh = to_heads(q_all)                           # (h, seq, hd)
        kh = to_heads(qkv[:, d:2 * d])                 # (h, S,   hd)
        vh = to_heads(qkv[:, 2 * d:])                  # (h, S,   hd)

        sc = jnp.einsum('hqd,hkd->hqk', qh, kh,
                        preferred_element_type=jnp.float32)          # (h,seq,S)
        # mask is added only to the nq mask-query rows (CLIP rows unmasked)
        probs = jnp.concatenate(
            [_softmax(sc[:, :nq] + amask[None]), _softmax(sc[:, nq:])], axis=1)
        ctx = jnp.einsum('hqk,hkd->hqd', probs.astype(bf16), vh,
                         preferred_element_type=jnp.float32)         # (h,seq,hd)
        ctx = jnp.transpose(ctx, (1, 0, 2)).reshape(-1, d).astype(bf16)

        y1 = y + _dot(ctx, wo) + bo                    # out_proj, residual

        # ------------------------------ MLP --------------------------------
        h1 = _dot(_layernorm(y1, ln2g, ln2b).astype(bf16), wfc) + bfc
        h1 = h1 * jax.nn.sigmoid(1.702 * h1)           # QuickGELU (f32)
        y2 = y1 + _dot(h1.astype(bf16), wpr) + bpr

        tok_ref[b] = y2                                # stays in VMEM

        @pl.when(l == n_layers - 1)
        def _store():
            out_ref[b] = y2[:nq]                       # mask-query tokens only


# ----------------------------------------------------- kernel 3: CLIP head
def _head_kernel(tok_ref, g_ref, b_ref, proj_ref, txt_ref, out_ref):
    bf16 = jnp.bfloat16
    xq = _layernorm(tok_ref[0], g_ref[...], b_ref[...])              # (nq, d)
    feat = jnp.dot(xq.astype(bf16), proj_ref[...],
                   preferred_element_type=jnp.float32)               # (nq, od)
    feat = feat * jax.lax.rsqrt(jnp.sum(feat * feat, axis=-1, keepdims=True))
    out_ref[0] = jnp.dot(feat.astype(bf16), txt_ref[...],
                         preferred_element_type=jnp.float32) * 100.0


# ---------------------------------------------------------- Pallas wrapper
def masqclip_vit(patches, add_mask, params, cfg, nq_pad):
    """embed kernel -> layer-chain kernel -> head kernel (all Pallas)."""
    bs, P, K = patches.shape
    d = cfg['width']
    heads = cfg['heads']
    hd = d // heads
    L = cfg['layers']
    d4 = 4 * d
    S = 1 + P
    seq = nq_pad + S
    od = params['proj'].shape[1]
    ncls = params['txt_t'].shape[1]

    # -------- 1. patch embed + token assembly + ln_pre ----------------------
    tokens = pl.pallas_call(
        functools.partial(_embed_kernel, nq_pad=nq_pad),
        out_shape=jax.ShapeDtypeStruct((bs, seq, d), jnp.float32),
        grid=(bs,),
        in_specs=[
            pl.BlockSpec((1, P, K), lambda b: (b, 0, 0)),
            pl.BlockSpec((K, d), lambda b: (0, 0)),
            pl.BlockSpec((1, d), lambda b: (0, 0)),
            pl.BlockSpec((S, d), lambda b: (0, 0)),
            pl.BlockSpec((1, d), lambda b: (0, 0)),
            pl.BlockSpec((1, d), lambda b: (0, 0)),
            pl.BlockSpec((1, d), lambda b: (0, 0)),
        ],
        out_specs=pl.BlockSpec((1, seq, d), lambda b: (b, 0, 0)),
        compiler_params=pltpu.CompilerParams(dimension_semantics=("parallel",)),
    )(patches, params['conv_w_t'], params['class_embedding'],
      params['positional_embedding'], params['mask_embeddings'],
      params['ln_pre_g'], params['ln_pre_b'])

    # -------- 2. residual attention blocks ----------------------------------
    b_blk = _batch_block(bs)
    nb = bs // b_blk
    amask_bf = add_mask.astype(jnp.bfloat16)        # -1e30 representable in bf16

    layer_args = (tokens, amask_bf,
                  params['ln1_g'], params['ln1_b'],
                  params['w_qkv'], params['b_qkv'],
                  params['w_nq'], params['b_nq'],
                  params['w_o'], params['b_o'],
                  params['ln2_g'], params['ln2_b'],
                  params['w_fc'], params['b_fc'],
                  params['w_pr'], params['b_pr'])

    def imap(kind):
        if kind == 'b':
            return lambda i, l: (i, 0, 0)
        return lambda i, l: (l, 0, 0)

    spec_defs = [
        ((b_blk, seq, d), 'b'),                       # ln_pre'd tokens (f32)
        ((b_blk, nq_pad, S), 'b'),                    # additive mask, nq rows
        ((1, 1, d), 'l'), ((1, 1, d), 'l'),           # ln_1 g, b
        ((1, d, 3 * d), 'l'), ((1, 1, 3 * d), 'l'),   # fused q/k/v (bf16)
        ((1, d, d), 'l'), ((1, 1, d), 'l'),           # new_q proj (bf16)
        ((1, d, d), 'l'), ((1, 1, d), 'l'),           # out proj (bf16)
        ((1, 1, d), 'l'), ((1, 1, d), 'l'),           # ln_2 g, b
        ((1, d, d4), 'l'), ((1, 1, d4), 'l'),         # mlp c_fc (bf16)
        ((1, d4, d), 'l'), ((1, 1, d), 'l'),          # mlp c_proj (bf16)
    ]
    in_specs = [pl.BlockSpec(shape, imap(kind)) for shape, kind in spec_defs]

    # explicit VMEM budget: double-buffered blocks + resident activation
    # scratch + per-image f32 intermediates, capped per generation.
    need = b_blk * seq * d * 4                              # token scratch
    for (shape, _), a in zip(spec_defs, layer_args):
        need += 2 * math.prod(shape) * jnp.dtype(a.dtype).itemsize
    need += 4 * (2 * heads * seq * S + seq * d4 + 8 * seq * d)
    cap = _vmem_capacity_bytes()
    vmem_limit = int(min(int(0.75 * cap), max((need * 3) // 2, 32 << 20)))

    kern = functools.partial(_layers_kernel, nq=nq_pad, heads=heads,
                             head_dim=hd, b_blk=b_blk)
    mask_tokens = pl.pallas_call(
        kern,
        out_shape=jax.ShapeDtypeStruct((bs, nq_pad, d), jnp.float32),
        grid=(nb, L),
        in_specs=in_specs,
        out_specs=pl.BlockSpec((b_blk, nq_pad, d), imap('b')),
        scratch_shapes=[pltpu.VMEM((b_blk, seq, d), jnp.float32)],
        compiler_params=pltpu.CompilerParams(
            dimension_semantics=("parallel", "arbitrary"),
            vmem_limit_bytes=vmem_limit),
    )(*layer_args)

    # -------- 3. ln_post + proj + normalized CLIP logits --------------------
    logits = pl.pallas_call(
        _head_kernel,
        out_shape=jax.ShapeDtypeStruct((bs, nq_pad, ncls), jnp.float32),
        grid=(bs,),
        in_specs=[
            pl.BlockSpec((1, nq_pad, d), lambda b: (b, 0, 0)),
            pl.BlockSpec((1, d), lambda b: (0, 0)),
            pl.BlockSpec((1, d), lambda b: (0, 0)),
            pl.BlockSpec((d, od), lambda b: (0, 0)),
            pl.BlockSpec((od, ncls), lambda b: (0, 0)),
        ],
        out_specs=pl.BlockSpec((1, nq_pad, ncls), lambda b: (b, 0, 0)),
        compiler_params=pltpu.CompilerParams(dimension_semantics=("parallel",)),
    )(mask_tokens, params['ln_post_g'], params['ln_post_b'],
      params['proj'], params['txt_t'])
    return logits


# ------------------------------------------------------------- JAX-side glue
def _preprocess(img, masks, cfg, nq):
    """Image preprocessing + (nq, S) additive attention-mask construction."""
    bs = img.shape[0]
    R = cfg['input_resolution']
    ps = cfg['patch_size']
    G = R // ps
    P = G * G
    S = P + 1

    x = img.astype(jnp.float32) / 255.0
    # TODO(synk): PyTorch bicubic uses a=-0.75; jax.image.resize's cubic kernel
    # differs slightly -- identical here because the test image is already RxR.
    x = jax.image.resize(x, (bs, 3, R, R), method='bicubic')
    mean = jnp.array([0.48145466, 0.4578275, 0.40821073], jnp.float32).reshape(1, 3, 1, 1)
    std = jnp.array([0.26862954, 0.26130258, 0.27577711], jnp.float32).reshape(1, 3, 1, 1)
    x = (x - mean) / std

    # patchify == Conv2d(3, width, k=ps, stride=ps, bias=False) as a matmul
    xp = x.reshape(bs, 3, G, ps, G, ps)
    xp = xp.transpose(0, 2, 4, 1, 3, 5).reshape(bs, P, 3 * ps * ps)

    # get_attn_masks: bilinear resize -> max_pool(ps) -> (>0) -> prepend ones ->
    # logical_not; converted to an additive (0 / -1e30) mask over the nq
    # mask-query rows ONLY (the S CLIP-query rows are unmasked by construction).
    m = jax.image.resize(masks.astype(jnp.float32), (bs, nq, R, R), method='bilinear')
    pooled = jax.lax.reduce_window(m, -jnp.inf, jax.lax.max,
                                   (1, 1, ps, ps), (1, 1, ps, ps), 'VALID')
    bin_m = (pooled > 0.0).reshape(bs, nq, P)
    allowed = jnp.concatenate([jnp.ones((bs, nq, 1), bool), bin_m], axis=2)
    add_q = jnp.where(allowed, 0.0, _NEG_MASK).astype(jnp.float32)   # (bs, nq, S)
    return xp, add_q


def masqclip_forward(img, masks, params, cfg):
    nq = masks.shape[1]
    xp, add_q = _preprocess(img, masks, cfg, nq)
    # pad nq to a multiple of 8 so all row splits in-kernel are sublane-aligned
    nq_pad = ((nq + 7) // 8) * 8
    if nq_pad != nq:
        add_q = jnp.pad(add_q, ((0, 0), (0, nq_pad - nq), (0, 0)))   # open rows
    logits = masqclip_vit(xp, add_q, params, cfg, nq_pad)            # Pallas
    return {'pred_logits': logits[:, :nq]}


# -------------------------------------------------- pure-JAX reference model
def reference_forward(img, masks, params, cfg):
    bs, nq = masks.shape[0], masks.shape[1]
    heads = cfg['heads']
    d = cfg['width']
    hd = d // heads
    f32 = lambda a: a.astype(jnp.float32)

    xp, add_q = _preprocess(img, masks, cfg, nq)
    S = xp.shape[1] + 1
    amask = jnp.concatenate([add_q, jnp.zeros((bs, S, S), jnp.float32)], axis=1)

    patch_tok = xp @ f32(params['conv_w_t'])
    cls = params['class_embedding']
    clip_tok = jnp.concatenate(
        [jnp.broadcast_to(cls[None], (bs, 1, d)), patch_tok], axis=1)
    clip_tok = clip_tok + params['positional_embedding'][None]
    mask_tok = jnp.broadcast_to((params['mask_embeddings'] + cls)[None], (bs, nq, d))
    y = jnp.concatenate([mask_tok, clip_tok], axis=1)
    y = _layernorm(y, params['ln_pre_g'], params['ln_pre_b'])

    for li in range(cfg['layers']):
        ln1 = _layernorm(y, params['ln1_g'][li], params['ln1_b'][li])
        clip_in, mask_in = ln1[:, nq:], ln1[:, :nq]
        qkv = clip_in @ f32(params['w_qkv'][li]) + params['b_qkv'][li]
        newq = mask_in @ f32(params['w_nq'][li]) + params['b_nq'][li]
        q_all = jnp.concatenate([newq, qkv[..., :d]], axis=1)
        k, v = qkv[..., d:2 * d], qkv[..., 2 * d:]

        def split_h(t):
            return t.reshape(bs, -1, heads, hd).transpose(0, 2, 1, 3)

        qh, kh, vh = split_h(q_all), split_h(k), split_h(v)
        scores = jnp.einsum('bhqf,bhkf->bhqk', qh, kh) + amask[:, None]
        probs = jax.nn.softmax(scores, axis=-1)
        ctx = jnp.einsum('bhqk,bhkf->bhqf', probs, vh)
        ctx = ctx.transpose(0, 2, 1, 3).reshape(bs, -1, d)
        y = y + ctx @ f32(params['w_o'][li]) + params['b_o'][li]
        h1 = (_layernorm(y, params['ln2_g'][li], params['ln2_b'][li])
              @ f32(params['w_fc'][li]) + params['b_fc'][li])
        h1 = h1 * jax.nn.sigmoid(1.702 * h1)
        y = y + h1 @ f32(params['w_pr'][li]) + params['b_pr'][li]

    xq = _layernorm(y[:, :nq], params['ln_post_g'], params['ln_post_b'])
    feat = xq @ f32(params['proj'])
    feat = feat / jnp.linalg.norm(feat, axis=-1, keepdims=True)
    return jnp.einsum('bqc,cn->bqn', feat, f32(params['txt_t'])) * 100.0


# ------------------------------------------------------------ params (synthetic)
def init_params(key, cfg, n_cls):
    d = cfg['width']
    ps = cfg['patch_size']
    R = cfg['input_resolution']
    L = cfg['layers']
    heads = cfg['heads']
    hd = d // heads
    od = cfg['output_dim']
    G = R // ps
    P = G * G
    scale = d ** -0.5
    s_attn = 1.0 / math.sqrt(hd)          # folded into w_q / w_nq (and biases)
    bf16 = jnp.bfloat16

    keys = jax.random.split(key, 9 + L)

    def nrm(k, shape, s=0.02):
        return (s * jax.random.normal(k, shape)).astype(jnp.float32)

    params = {}
    conv_w = nrm(keys[0], (d, 3, ps, ps))
    params['conv_w_t'] = conv_w.reshape(d, 3 * ps * ps).T.astype(bf16)   # (3*ps*ps, d)
    params['class_embedding'] = nrm(keys[1], (1, d), scale)
    params['positional_embedding'] = nrm(keys[2], (P + 1, d), scale)
    # MasQCLIP: mask_embeddings initialized from positional_embedding[0]
    params['mask_embeddings'] = params['positional_embedding'][0:1]
    params['ln_pre_g'] = 1.0 + nrm(keys[3], (1, d), 0.1)
    params['ln_pre_b'] = nrm(keys[4], (1, d), 0.1)
    params['ln_post_g'] = 1.0 + nrm(keys[5], (1, d), 0.1)
    params['ln_post_b'] = nrm(keys[6], (1, d), 0.1)
    params['proj'] = nrm(keys[7], (d, od), scale).astype(bf16)
    # TODO(synk): CLIP text encoder (encode_text over class names) has no Pallas
    # equivalent here; replaced by deterministic synthetic normalized embeddings.
    te = nrm(keys[8], (n_cls, od), 1.0)
    te = te / jnp.linalg.norm(te, axis=-1, keepdims=True)
    params['txt_t'] = te.T.astype(bf16)                                   # (od, n_cls)

    names = ('ln1_g', 'ln1_b', 'w_qkv', 'b_qkv', 'w_nq', 'b_nq', 'w_o', 'b_o',
             'ln2_g', 'ln2_b', 'w_fc', 'b_fc', 'w_pr', 'b_pr')
    stk = {n: [] for n in names}
    for li in range(L):
        lk = jax.random.split(keys[9 + li], 14)
        in_w = nrm(lk[0], (3 * d, d))                 # torch in_proj_weight (3d, d)
        in_b = nrm(lk[1], (3 * d,), 0.01)
        wq = in_w[:d].T * s_attn                      # 1/sqrt(hd) folded into q
        wk, wv = in_w[d:2 * d].T, in_w[2 * d:].T
        bq = in_b[:d] * s_attn
        bk, bv = in_b[d:2 * d], in_b[2 * d:]
        stk['w_qkv'].append(jnp.concatenate([wq, wk, wv], axis=1).astype(bf16))
        stk['b_qkv'].append(jnp.concatenate([bq, bk, bv])[None].astype(jnp.float32))
        wnq = nrm(lk[2], (d, d))
        bnq = nrm(lk[3], (d,), 0.01)
        stk['w_nq'].append((wnq.T * s_attn).astype(bf16))
        stk['b_nq'].append((bnq * s_attn)[None].astype(jnp.float32))
        wo = nrm(lk[4], (d, d))
        stk['w_o'].append(wo.T.astype(bf16))
        stk['b_o'].append(nrm(lk[5], (1, d), 0.01))
        stk['ln1_g'].append(1.0 + nrm(lk[6], (1, d), 0.1))
        stk['ln1_b'].append(nrm(lk[7], (1, d), 0.1))
        stk['ln2_g'].append(1.0 + nrm(lk[8], (1, d), 0.1))
        stk['ln2_b'].append(nrm(lk[9], (1, d), 0.1))
        stk['w_fc'].append(nrm(lk[10], (4 * d, d)).T.astype(bf16))        # (d, 4d)
        stk['b_fc'].append(nrm(lk[12], (1, 4 * d), 0.01))
        stk['w_pr'].append(nrm(lk[11], (d, 4 * d)).T.astype(bf16))        # (4d, d)
        stk['b_pr'].append(nrm(lk[13], (1, d), 0.01))

    for n in names:
        params[n] = jnp.stack(stk[n])                  # leading layer axis
    return params


# --------------------------------------------------------------------- main
if __name__ == "__main__":
    cfg = dict(input_resolution=16, patch_size=4, width=32,
               layers=2, heads=4, output_dim=16)
    bs, nq, n_cls = 2, 6, 6          # nq=6 exercises the pad-to-8 path

    key = jax.random.PRNGKey(0)
    k_img, k_mask, k_par = jax.random.split(key, 3)
    img = jax.random.uniform(
        k_img, (bs, 3, cfg['input_resolution'], cfg['input_resolution']),
        minval=0.0, maxval=255.0)
    masks = jax.random.normal(
        k_mask, (bs, nq, cfg['input_resolution'], cfg['input_resolution'])) - 1.5

    params = init_params(k_par, cfg, n_cls)

    out = masqclip_forward(img, masks, params, cfg)
    logits = jax.block_until_ready(out['pred_logits'])
    assert logits.shape == (bs, nq, n_cls), logits.shape

    ref = reference_forward(img, masks, params, cfg)
    err = float(jnp.max(jnp.abs(logits - ref)))
    # Pallas path runs matmuls in bf16 (f32 accumulation) and uses EUP approx
    # reciprocal in softmax; the reference is pure f32 on the same weights.
    if not (err < 2.0):
        raise AssertionError(f"Pallas output mismatch vs JAX reference: max |diff| = {err}")

    print("KERNEL_OK")
</pallas_src>

<mosaic_0001>
module attributes {stable_mosaic.version = 11 : i64} {
  func.func @_embed_kernel(%arg0: i32, %arg1: memref<1x16x48xf32, #tpu.memory_space<vmem>>, %arg2: memref<48x32xbf16, #tpu.memory_space<vmem>>, %arg3: memref<1x32xf32, #tpu.memory_space<vmem>>, %arg4: memref<17x32xf32, #tpu.memory_space<vmem>>, %arg5: memref<1x32xf32, #tpu.memory_space<vmem>>, %arg6: memref<1x32xf32, #tpu.memory_space<vmem>>, %arg7: memref<1x32xf32, #tpu.memory_space<vmem>>, %arg8: memref<1x25x32xf32, #tpu.memory_space<vmem>>) attributes {dimension_semantics = [#tpu.dimension_semantics<parallel>], iteration_bounds = array<i64: 2>, scalar_prefetch = 0 : i64, scratch_operands = 0 : i64, tpu.core_type = #tpu.core_type<tc>, window_params = [{transform_indices = @transform_0, window_bounds = array<i64: 1, 16, 48>}, {pipeline_mode = #tpu.pipeline_mode<synchronous>, transform_indices = @transform_1, window_bounds = array<i64: 48, 32>}, {pipeline_mode = #tpu.pipeline_mode<synchronous>, transform_indices = @transform_2, window_bounds = array<i64: 1, 32>}, {pipeline_mode = #tpu.pipeline_mode<synchronous>, transform_indices = @transform_3, window_bounds = array<i64: 17, 32>}, {pipeline_mode = #tpu.pipeline_mode<synchronous>, transform_indices = @transform_4, window_bounds = array<i64: 1, 32>}, {pipeline_mode = #tpu.pipeline_mode<synchronous>, transform_indices = @transform_5, window_bounds = array<i64: 1, 32>}, {pipeline_mode = #tpu.pipeline_mode<synchronous>, transform_indices = @transform_6, window_bounds = array<i64: 1, 32>}, {transform_indices = @transform_7, window_bounds = array<i64: 1, 25, 32>}]} {
    %c0 = arith.constant 0 : index
    %c0_0 = arith.constant 0 : index
    %c0_1 = arith.constant 0 : index
    %0 = vector.load %arg1[%c0, %c0_0, %c0_1] : memref<1x16x48xf32, #tpu.memory_space<vmem>>, vector<1x16x48xf32>
    %1 = vector.shape_cast %0 : vector<1x16x48xf32> to vector<16x48xf32>
    %2 = arith.truncf %1 : vector<16x48xf32> to vector<16x48xbf16>
    %c0_2 = arith.constant 0 : index
    %c0_3 = arith.constant 0 : index
    %3 = vector.load %arg2[%c0_2, %c0_3] : memref<48x32xbf16, #tpu.memory_space<vmem>>, vector<48x32xbf16>
    %cst = arith.constant dense<0.000000e+00> : vector<16x32xf32>
    %4 = tpu.matmul %2, %3, %cst {dimension_numbers = #tpu.dot_dimension_numbers<[1], [0], [0], [1], [0, 0, 1, 1], [], []>} : vector<16x48xbf16>, vector<48x32xbf16>, vector<16x32xf32> -> vector<16x32xf32>
    %c0_4 = arith.constant 0 : index
    %c0_5 = arith.constant 0 : index
    %5 = vector.load %arg3[%c0_4, %c0_5] : memref<1x32xf32, #tpu.memory_space<vmem>>, vector<1x32xf32>
    %6 = tpu.concatenate %5, %4 in 0 : vector<1x32xf32>, vector<16x32xf32> -> vector<17x32xf32>
    %c0_6 = arith.constant 0 : index
    %c0_7 = arith.constant 0 : index
    %7 = vector.load %arg4[%c0_6, %c0_7] : memref<17x32xf32, #tpu.memory_space<vmem>>, vector<17x32xf32>
    %8 = arith.addf %6, %7 : vector<17x32xf32>
    %c0_8 = arith.constant 0 : index
    %c0_9 = arith.constant 0 : index
    %9 = vector.load %arg5[%c0_8, %c0_9] : memref<1x32xf32, #tpu.memory_space<vmem>>, vector<1x32xf32>
    %10 = arith.addf %9, %5 : vector<1x32xf32>
    %11 = vector.shape_cast %10 : vector<1x32xf32> to vector<1x32xf32>
    %12 = vector.broadcast %11 : vector<1x32xf32> to vector<8x32xf32>
    %13 = tpu.concatenate %12, %8 in 0 : vector<8x32xf32>, vector<17x32xf32> -> vector<25x32xf32>
    %c0_10 = arith.constant 0 : index
    %c0_11 = arith.constant 0 : index
    %14 = vector.load %arg6[%c0_10, %c0_11] : memref<1x32xf32, #tpu.memory_space<vmem>>, vector<1x32xf32>
    %c0_12 = arith.constant 0 : index
    %c0_13 = arith.constant 0 : index
    %15 = vector.load %arg7[%c0_12, %c0_13] : memref<1x32xf32, #tpu.memory_space<vmem>>, vector<1x32xf32>
    %cst_14 = arith.constant dense<0.000000e+00> : vector<25xf32>
    %16 = vector.multi_reduction <add>, %13, %cst_14 [1] : vector<25x32xf32> to vector<25xf32>
    %17 = vector.shape_cast %16 : vector<25xf32> to vector<25x1xf32>
    %cst_15 = arith.constant 3.200000e+01 : f32
    %18 = vector.broadcast %cst_15 : f32 to vector<25x1xf32>
    %19 = arith.divf %17, %18 : vector<25x1xf32>
    %20 = vector.broadcast %19 : vector<25x1xf32> to vector<25x32xf32>
    %21 = arith.subf %13, %20 : vector<25x32xf32>
    %22 = arith.mulf %21, %21 : vector<25x32xf32>
    %cst_16 = arith.constant dense<0.000000e+00> : vector<25xf32>
    %23 = vector.multi_reduction <add>, %22, %cst_16 [1] : vector<25x32xf32> to vector<25xf32>
    %24 = vector.shape_cast %23 : vector<25xf32> to vector<25x1xf32>
    %cst_17 = arith.constant 3.200000e+01 : f32
    %25 = vector.broadcast %cst_17 : f32 to vector<25x1xf32>
    %26 = arith.divf %24, %25 : vector<25x1xf32>
    %27 = vector.broadcast %19 : vector<25x1xf32> to vector<25x32xf32>
    %28 = arith.subf %13, %27 : vector<25x32xf32>
    %cst_18 = arith.constant 9.99999974E-6 : f32
    %29 = vector.broadcast %cst_18 : f32 to vector<25x1xf32>
    %30 = arith.addf %26, %29 : vector<25x1xf32>
    %31 = math.rsqrt %30 : vector<25x1xf32>
    %32 = vector.broadcast %31 : vector<25x1xf32> to vector<25x32xf32>
    %33 = arith.mulf %28, %32 : vector<25x32xf32>
    %34 = vector.broadcast %14 : vector<1x32xf32> to vector<25x32xf32>
    %35 = arith.mulf %33, %34 : vector<25x32xf32>
    %36 = vector.broadcast %15 : vector<1x32xf32> to vector<25x32xf32>
    %37 = arith.addf %35, %36 : vector<25x32xf32>
    %c0_19 = arith.constant 0 : index
    %c0_20 = arith.constant 0 : index
    %c0_21 = arith.constant 0 : index
    %38 = vector.load %arg8[%c0_19, %c0_20, %c0_21] : memref<1x25x32xf32, #tpu.memory_space<vmem>>, vector<1x25x32xf32>
    %39 = vector.shape_cast %38 : vector<1x25x32xf32> to vector<25x32xf32>
    %40 = vector.shape_cast %37 : vector<25x32xf32> to vector<1x25x32xf32>
    tpu.vector_store %arg8[%c0_19, %c0_20, %c0_21], %40 {strides = array<i32>} : memref<1x25x32xf32, #tpu.memory_space<vmem>>, vector<1x25x32xf32>,
    return
  }
  func.func @transform_0(%arg0: i32) -> (i32, i32, i32) {
    %c0_i32 = arith.constant 0 : i32
    %c0_i32_0 = arith.constant 0 : i32
    %c0_i32_1 = arith.constant 0 : i32
    return %arg0, %c0_i32, %c0_i32_0 : i32, i32, i32
  }
  func.func @transform_1(%arg0: i32) -> (i32, i32) {
    %c0_i32 = arith.constant 0 : i32
    %c0_i32_0 = arith.constant 0 : i32
    %c0_i32_1 = arith.constant 0 : i32
    return %c0_i32, %c0_i32_0 : i32, i32
  }
  func.func @transform_2(%arg0: i32) -> (i32, i32) {
    %c0_i32 = arith.constant 0 : i32
    %c0_i32_0 = arith.constant 0 : i32
    %c0_i32_1 = arith.constant 0 : i32
    return %c0_i32, %c0_i32_0 : i32, i32
  }
  func.func @transform_3(%arg0: i32) -> (i32, i32) {
    %c0_i32 = arith.constant 0 : i32
    %c0_i32_0 = arith.constant 0 : i32
    %c0_i32_1 = arith.constant 0 : i32
    return %c0_i32, %c0_i32_0 : i32, i32
  }
  func.func @transform_4(%arg0: i32) -> (i32, i32) {
    %c0_i32 = arith.constant 0 : i32
    %c0_i32_0 = arith.constant 0 : i32
    %c0_i32_1 = arith.constant 0 : i32
    return %c0_i32, %c0_i32_0 : i32, i32
  }
  func.func @transform_5(%arg0: i32) -> (i32, i32) {
    %c0_i32 = arith.constant 0 : i32
    %c0_i32_0 = arith.constant 0 : i32
    %c0_i32_1 = arith.constant 0 : i32
    return %c0_i32, %c0_i32_0 : i32, i32
  }
  func.func @transform_6(%arg0: i32) -> (i32, i32) {
    %c0_i32 = arith.constant 0 : i32
    %c0_i32_0 = arith.constant 0 : i32
    %c0_i32_1 = arith.constant 0 : i32
    return %c0_i32, %c0_i32_0 : i32, i32
  }
  func.func @transform_7(%arg0: i32) -> (i32, i32, i32) {
    %c0_i32 = arith.constant 0 : i32
    %c0_i32_0 = arith.constant 0 : i32
    %c0_i32_1 = arith.constant 0 : i32
    return %arg0, %c0_i32, %c0_i32_0 : i32, i32, i32
  }
}

</mosaic_0001>

<bundles_post_ra>
// kernel: tpu_custom_call.1
= control target key start
LH: loop header
LB: loop body
LE: loop exit
PB: predicated region body
PF: predicated region fallthrough
CT: control target
= control target key end

     0   :  { %12 = vsyncpa [#allocation3], 0  ;;  %s692_s24 = smov 0   ;;  %s768_s0 = inlined_call_operand.vmem [shape: f32[2,16,48], index: 0, kind: input, shape index: {}]   ;;  %s769_s1 = inlined_call_operand.vmem [shape: bf16[48,32], index: 1, kind: input, shape index: {}]   ;;  %s770_s2 = inlined_call_operand.vmem [shape: f32[1,32], index: 2, kind: input, shape index: {}]   ;;  %s771_s3 = inlined_call_operand.hbm [shape: f32[17,32], index: 3, kind: input, shape index: {}]   ;;  %s772_s4 = inlined_call_operand.vmem [shape: f32[1,32], index: 4, kind: input, shape index: {}]   ;;  %s773_s5 = inlined_call_operand.vmem [shape: f32[1,32], index: 5, kind: input, shape index: {}]   ;;  %s774_s6 = inlined_call_operand.vmem [shape: f32[1,32], index: 6, kind: input, shape index: {}]   ;;  %s775_s7 = inlined_call_operand.vmem [shape: f32[2,25,32], index: 7, kind: output, shape index: {}]  }
   0x1 LB: > { %s698_s25 = sadd.s32 4294967295, %s645_s24   ;;  %p542_p0 = scmp.ge.s32.totalorder %s645_s24, 1  ;;  %s645_s24 = sphi %s692_s24, %s18_s24  }
   0x2   : > { %p201_p1 = scmp.lt.s32.totalorder %s645_s24, 3  ;;  %s647_s26 = smov [#allocation2]  }
   0x3   : > { %s219_s27 = sshll.u32 %s647_s26, 4  ;;  %p583_p3 = scmp.eq.s32.totalorder %s698_s25, 0  ;;  %s220_s27 = int_to_ptr.vmem [resolvable:$true] %s219_s27 }
   0x4   : > { %p702_p2 = pnand %p542_p0, %p201_p1  ;;  %s620_s29 = scalar_lea.vmem %s220_s27, 384 }
   0x5   : > { %p621_p7 = scmp.ne.s32.totalorder %s220_s27, %s620_s29  ;;  %p628_p10 = scmp.lt.s32.totalorder %s220_s27, %s220_s27 }
   0x6   : > { %p579_p4 = pneg %p702_p2  ;;  %p629_p11 = scmp.lt.s32.totalorder %s620_s29, %s620_s29 }
   0x8   : > { %p580_p5 = pnand %p583_p3, %p579_p4  ;;  %p630_p12 = por %p629_p11, %p628_p10 }
   0xa   : > { %p611_p6 = pneg %p580_p5 }
   0xc   : > { %p623_p8 = pnand %p621_p7, %p611_p6 }
   0xe   : > { %p624_p9 = pneg %p623_p8 }
  0x10   : > { %p631_p13 = pnand %p630_p12, %p624_p9 }
  0x12   : > { %634 = shalt.err (!%p631_p13)
}
  0x13   : > { %s648_s30 = smov 128   ;;  %s649_s8 = smov 8  }
  0x14   : > { %582 = dma.hbm_to_vmem [thread:$0]  (!%p580_p5), %s771_s3, 384, %s220_s27, [#allocation3], %s648_s30, %s648_s30, %s649_s8  }
  0x15   : > { %252 = sbr.rel (%p702_p2) target bundleno = 555 (0x22b), region = 48 }
  0x1a   : > { %640 = dma.done.wait (%p583_p3), [#allocation3], 384  }
  0x1b   : > { %642 = vsyncadd (%p583_p3), [#allocation3], 4294966912  ;;  %p284_p0 = scmp.lt.s32.totalorder %s698_s25, 1  ;;  %v650_v0 = vmov 0.0   ;;  %vm651_vm0 = vmmov 0   ;;  %v387_v1 = vlaneseq  ;;  %v598_v3 = vld [vmem:[%s769_s1 + $0x10] sm:$0xff]  }
  0x1c   : > { %565 = vmatprep.subr.bf16.mxu0 %v650_v0  ;;  %571 = vmatprep.mubr.msk.bf16.mxu0 %vm651_vm0, %v650_v0  ;;  %v599_v4 = vld [vmem:[%s769_s1 + $0x8] sm:$0xff]   ;;  %v367_v5 = vld [vmem:[%s770_s2] sm:$0x1]  ;;  %vm394_vm1 = vcmask 261120   ;;  %vm322_vm2 = vcmask 392192   ;;  %vm370_vm3 = vcmask 1040384  }
  0x1d   : > { %s778_s25 = smov (!%p284_p0, %s698_s25), 1  ;;  %v388_v2 = vshrl.u32 %v387_v1, 7  ;;  %566 = vmatpush3.bf16.msra.mxu0 %v598_v3  ;;  %v384_v7 = vld [vmem:[%s772_s4] sm:$0x1]  ;;  %v379_v27 = vld [vmem:[#allocation2 + $0x8] sm:$0xff]  ;;  %vm404_vm4 = vcmask 253952  }
  0x1e   : > { %s559_s13 = sshll.u32 %s778_s25, 4  ;;  %567 = vmatprep.subr.bf16.mxu0 %v650_v0  ;;  %v385_v8 = vadd.f32 %v384_v7, %v367_v5  ;;  %v600_v9 = vld [vmem:[%s769_s1] sm:$0xff]   ;;  %v380_v31 = vld [vmem:[#allocation2 + $0x10] sm:$0x1]  ;;  %s560_s29 = sshll.u32 %s778_s25, 5 }
  0x1f   : > { %s288_s18 = scalar_lea.vmem %s768_s0, %s559_s13  ;;  %v389_v6 = vsub.s32 0, %v388_v2  ;;  %v378_v20 = vld [vmem:[#allocation2] sm:$0xff]  ;;  %s293_s11 = scalar_lea.vmem %s775_s7, %s560_s29 }
  0x20   : > { %v295_v10 = vld [vmem:[%s288_s18] sm:$0xff]  ;;  %v296_v11 = vld [vmem:[%s288_s18 + $0x8] sm:$0xff] }
  0x21   : > { %568 = vmatpush3.bf16.msra.mxu0 %v599_v4  ;;  %v390_v12 = vrot.slane %v385_v8, %v389_v6  ;;  %v297_v13 = vpack.c.bf16 %v296_v11, %v295_v10  ;;  %v555_v56 = vld [vmem:[%s773_s5] ss:$0 sm:$0xff] }
  0x22   : > { %569 = vmatprep.subr.bf16.mxu0 %v650_v0  ;;  %v556_v58 = vld [vmem:[%s774_s6] ss:$0 sm:$0xff] }
  0x23   : > { %v395_v14 = vsel %vm394_vm1, %v390_v12, 0.0 }
  0x24   : > { %396 = vadd.xlane.f32.xlu0 %v395_v14 }
  0x25   : > { %570 = vmatpush3.bf16.msra.mxu0 %v600_v9 }
  0x28   : > { %572 = vmatmul.mubr.msk.bf16.vlgmr.msra.gmra.mxu0 %vm322_vm2, %v297_v13 }
  0xad   : > { %v397_v15 = vpop.xlane.xlu0 %396 }
  0xae   : > { %v409_v16 = vmul.f32 0.03125, %v397_v15 }
  0xb0   : > { %v413_v18 = vsub.f32 %v390_v12, %v409_v16 }
  0xb2   : > { %v417_v25 = vmul.f32 %v413_v18, %v413_v18 }
  0xb4   : > { %v421_v32 = vsel %vm394_vm1, %v417_v25, 0.0 }
  0xe8   : > { %v360_v17 = vpop.f32.mrf.mxu0 }
  0xe9   : > { %v371_v19 = vrot.slane %v360_v17, 7 }
  0xea   : > { %v573_v21 = vpop.f32.mrf.mxu0 }
  0xeb   : > { %v377_v22 = vsel %vm370_vm3, %v367_v5, %v371_v19 }
  0xec   : > { %v363_v23 = vpop.f32.mrf.mxu0  ;;  %v381_v24 = vadd.f32 %v378_v20, %v377_v22 }
  0xed   : > { %v372_v26 = vrot.slane %v363_v23, 7 }
  0xee   : > { %v574_v28 = vpop.f32.mrf.mxu0  ;;  %v398_v29 = vsel %vm394_vm1, %v381_v24, 0.0 }
  0xef   : > { %399 = vadd.xlane.f32.xlu0 %v398_v29  ;;  %v373_v30 = vsel %vm370_vm3, %v371_v19, %v372_v26  ;;  %v383_v35 = vadd.f32 %v380_v31, %v372_v26 }
  0xf0   : > { %v382_v33 = vadd.f32 %v379_v27, %v373_v30 }
  0xf1   : > { %v405_v36 = vsel %vm404_vm4, %v383_v35, 0.0 }
  0xf2   : > { %v401_v34 = vsel %vm394_vm1, %v382_v33, 0.0 }
  0xf3   : > { %422 = vadd.xlane.f32.xlu0 %v421_v32  ;;  %402 = vadd.xlane.f32.xlu1 %v401_v34 }
  0xf7   : > { %406 = vadd.xlane.f32.xlu1 %v405_v36 }
 0x178   : > { %v400_v37 = vpop.xlane.xlu0 %399 }
 0x179   : > { %v410_v38 = vmul.f32 0.03125, %v400_v37 }
 0x17b   : > { %v414_v39 = vsub.f32 %v381_v24, %v410_v38 }
 0x17c   : > { %v423_v40 = vpop.xlane.xlu0 %422  ;;  %v403_v41 = vpop.xlane.xlu1 %402 }
 0x17d   : > { %v433_v42 = vmul.f32 0.03125, %v423_v40  ;;  %v411_v43 = vmul.f32 0.03125, %v403_v41  ;;  %v418_v44 = vmul.f32 %v414_v39, %v414_v39 }
 0x17f   : > { %v437_v45 = vadd.f32 1e-05, %v433_v42  ;;  %v415_v46 = vsub.f32 %v382_v33, %v411_v43  ;;  %v424_v47 = vsel %vm394_vm1, %v418_v44, 0.0 }
 0x180   : > { %425 = vadd.xlane.f32.xlu1 %v424_v47  ;;  %v407_v48 = vpop.xlane.xlu1 %406 }
 0x181   : > { %601 = vrsqrt.f32 %v437_v45  ;;  %v412_v49 = vmul.f32 0.03125, %v407_v48  ;;  %v419_v50 = vmul.f32 %v415_v46, %v415_v46 }
 0x183   : > { %v416_v51 = vsub.f32 %v383_v35, %v412_v49  ;;  %v427_v52 = vsel %vm394_vm1, %v419_v50, 0.0 }
 0x184   : > { %428 = vadd.xlane.f32.xlu0 %v427_v52 }
 0x185   : > { %v420_v53 = vmul.f32 %v416_v51, %v416_v51 }
 0x187   : > { %v430_v54 = vsel %vm404_vm4, %v420_v53, 0.0 }
 0x188   : > { %431 = vadd.xlane.f32.xlu1 %v430_v54 }
 0x18e   : > { %v602_v55 = vpop.eup %601 }
 0x18f   : > { %v445_v57 = vmul.f32 %v602_v55, %v413_v18 }
 0x191   : > { %v455_v59 = vmul.f32 %v555_v56, %v445_v57 }
 0x193   : > { %v465_v60 = vadd.f32 %v556_v58, %v455_v59 }
 0x195   : > { %469 = vst.msk [vmem:[%s293_s11] sm:$0xff] %vm394_vm1, %v465_v60 }
 0x209   : > { %v426_v61 = vpop.xlane.xlu1 %425 }
 0x20a   : > { %v434_v62 = vmul.f32 0.03125, %v426_v61 }
 0x20c   : > { %v438_v63 = vadd.f32 1e-05, %v434_v62 }
 0x20d   : > { %v429_v0 = vpop.xlane.xlu0 %428 }
 0x20e   : > { %603 = vrsqrt.f32 %v438_v63  ;;  %v435_v1 = vmul.f32 0.03125, %v429_v0 }
 0x210   : > { %v439_v2 = vadd.f32 1e-05, %v435_v1 }
 0x211   : > { %v432_v3 = vpop.xlane.xlu1 %431 }
 0x212   : > { %605 = vrsqrt.f32 %v439_v2  ;;  %v436_v4 = vmul.f32 0.03125, %v432_v3 }
 0x214   : > { %v440_v5 = vadd.f32 1e-05, %v436_v4 }
 0x216   : > { %607 = vrsqrt.f32 %v440_v5 }
 0x21b   : > { %v604_v6 = vpop.eup %603 }
 0x21c   : > { %v446_v7 = vmul.f32 %v604_v6, %v414_v39 }
 0x21e   : > { %v456_v8 = vmul.f32 %v555_v56, %v446_v7 }
 0x21f   : > { %v606_v9 = vpop.eup %605 }
 0x220   : > { %v466_v10 = vadd.f32 %v556_v58, %v456_v8  ;;  %v447_v11 = vmul.f32 %v606_v9, %v415_v46 }
 0x222   : > { %470 = vst.msk [vmem:[%s293_s11 + $0x8] sm:$0xff] %vm394_vm1, %v466_v10  ;;  %v457_v12 = vmul.f32 %v555_v56, %v447_v11 }
 0x223   : > { %v608_v13 = vpop.eup %607 }
 0x224   : > { %v467_v14 = vadd.f32 %v556_v58, %v457_v12  ;;  %v448_v15 = vmul.f32 %v608_v13, %v416_v51 }
 0x226   : > { %471 = vst.msk [vmem:[%s293_s11 + $0x10] sm:$0xff] %vm394_vm1, %v467_v14  ;;  %v458_v16 = vmul.f32 %v555_v56, %v448_v15 }
 0x228   : > { %v468_v17 = vadd.f32 %v556_v58, %v458_v16 }
 0x22a   : > { %472 = vst.msk [vmem:[%s293_s11 + $0x18] sm:$0x1] %vm404_vm4, %v468_v17 }
 0x22b PF: > { %s18_s24 = sadd.s32 1, %s645_s24  }
 0x22c   : > { %p15_p1 = scmp.ge.s32.totalorder %s18_s24, 4  }
 0x22e   :  { %17 = sbr.rel (!%p15_p1) target bundleno = 1 (0x1), region = 83 }
 0x233   :  { %494 = vsyncpa [#allocation3], 1 }
 0x234   :  { %496 = vsyncpa [#allocation3 + $0x1], 1 }

</bundles_post_ra>
